<compile_context>
chip_gen: v7x
topology: tpu7x:2x2x1
jax: 0.10.0
libtpu: 0.0.40
codegen_flags: <defaults>
</compile_context>

<pallas_src>
import functools
import math

import jax
import jax.numpy as jnp
from jax.experimental import pallas as pl
from jax.experimental.pallas import tpu as pltpu


def make_divisible(v, divisor=8, min_value=None):
    min_value = min_value or divisor
    new_v = max(min_value, int(v + divisor / 2) // divisor * divisor)
    if new_v < 0.9 * v:
        new_v += divisor
    return new_v


def _se_kernel(x_ref, wr_ref, b1_ref, we_ref, b2_ref, o_ref, *, inv_hw):
    """Fused SqueezeExcite on one batched slab.

    x_ref/o_ref : (bt, C, HW) in the input dtype.
    wr_ref (C, Rp), b1_ref (1, Rp) -- conv_reduce 1x1 weight^T / bias (R zero-padded)
    we_ref (Rp, C), b2_ref (1, C)  -- conv_expand 1x1 weight^T / bias
    """
    x = x_ref[...]

    # Global average pool (AdaptiveAvgPool2d(1)); f32 accumulation straight off
    # the ref -- no f32 copy of the slab is materialized for the pooling pass.
    pooled = jnp.sum(x, axis=-1, dtype=jnp.float32) * inv_hw           # (bt, C)

    # conv_reduce (1x1) + ReLU on the MXU (f32 accumulation).
    red = jnp.dot(pooled, wr_ref[...].astype(jnp.float32),
                  preferred_element_type=jnp.float32)                  # (bt, Rp)
    red = jnp.maximum(red + b1_ref[...].astype(jnp.float32), 0.0)

    # conv_expand (1x1) + sigmoid gate on the MXU.
    gate = jnp.dot(red, we_ref[...].astype(jnp.float32),
                   preferred_element_type=jnp.float32)                 # (bt, C)
    gate = jax.nn.sigmoid(gate + b2_ref[...].astype(jnp.float32))

    # Gate multiply in f32 (matches reference numerics); cast the product only.
    o_ref[...] = (x.astype(jnp.float32) * gate[:, :, None]).astype(o_ref.dtype)


def _largest_divisor_at_most(n, k):
    k = max(1, min(int(k), int(n)))
    while n % k:
        k -= 1
    return k


def squeeze_excite(x, w_reduce, b_reduce, w_expand, b_expand, *,
                   slab_target_bytes=2 * 1024 * 1024,
                   vmem_limit_bytes=32 * 1024 * 1024,
                   core_parallel=False):
    """SqueezeExcite forward.

    x: (B, C, H, W) NCHW.  Weights follow the PyTorch Conv2d 1x1 layout with the
    trailing 1x1 spatial dims squeezed:
      w_reduce (R, C), b_reduce (R,), w_expand (C, R), b_expand (C,).
    Set core_parallel=True on v7x (2 TensorCores per chip) to shard the batch
    grid axis across cores.
    """
    B, C, H, W = x.shape
    R = w_reduce.shape[0]
    HW = H * W
    itemsize = jnp.dtype(x.dtype).itemsize

    # Layout: NCHW-flattened (B, C, HW); zero data movement (pure reshape), no
    # wrapper transposes (each would add a full HBM read+write pass on a purely
    # HBM-bound op).  When HW % 128 != 0 the writeback uses masked lane stores,
    # which is still far cheaper than any repack.
    # NOTE: when C % 8 != 0 the (C, HW) tile pads sublanes to 8 (2x slab
    # VMEM/VALU); this only occurs for tiny toy channel counts where the whole
    # layer is negligible anyway.
    x_flat = x.reshape(B, C, HW)

    # ---- batch tiling: ~2 MiB per direction per step (HBM-roofline sweet
    # spot), bt divides B (no partial edge block), >=4 grid steps when B allows
    # (>=2 per core on v7x). --------------------------------------------------
    slab_bytes = C * HW * itemsize                 # one image, one direction
    bt = max(1, slab_target_bytes // slab_bytes)
    bt = min(bt, B)
    if B >= 4:
        bt = min(bt, B // 4)
    bt = _largest_divisor_at_most(B, bt)
    grid = (B // bt,)
    # NOTE: if a single image slab ever exceeds VMEM (huge C*HW), the right
    # fallback is memory_space=pl.ANY + an inner emit_pipeline over spatial
    # tiles (pooling pass, then a re-streamed gated-multiply pass).

    # ---- tiny-MLP weights: pre-transpose for row-major MXU dots and zero-pad
    # the reduced dim R up to a multiple of 8 (exact: padded ReLU outputs are 0
    # and padded expand rows are 0). ------------------------------------------
    Rp = ((R + 7) // 8) * 8
    wr_t = jnp.zeros((C, Rp), w_reduce.dtype).at[:, :R].set(w_reduce.T)
    we_t = jnp.zeros((Rp, C), w_expand.dtype).at[:R, :].set(w_expand.T)
    b1 = jnp.zeros((1, Rp), b_reduce.dtype).at[0, :R].set(b_reduce)
    b2 = b_expand.reshape(1, C)

    kernel = functools.partial(_se_kernel, inv_hw=1.0 / HW)
    sem = (pltpu.CORE_PARALLEL,) if core_parallel else ("parallel",)

    cost = pl.CostEstimate(
        flops=int(3 * B * C * HW + 4 * B * C * Rp),
        transcendentals=int(B * C),
        bytes_accessed=int(2 * B * C * HW * itemsize + (2 * C * Rp + Rp + C) * 4),
    )

    out_flat = pl.pallas_call(
        kernel,
        out_shape=jax.ShapeDtypeStruct((B, C, HW), x.dtype),
        grid_spec=pltpu.PrefetchScalarGridSpec(
            num_scalar_prefetch=0,
            grid=grid,
            in_specs=[
                pl.BlockSpec((bt, C, HW), lambda b: (b, 0, 0)),
                pl.BlockSpec((C, Rp), lambda b: (0, 0)),
                pl.BlockSpec((1, Rp), lambda b: (0, 0)),
                pl.BlockSpec((Rp, C), lambda b: (0, 0)),
                pl.BlockSpec((1, C), lambda b: (0, 0)),
            ],
            out_specs=pl.BlockSpec((bt, C, HW), lambda b: (b, 0, 0)),
        ),
        compiler_params=pltpu.CompilerParams(
            dimension_semantics=sem,
            vmem_limit_bytes=vmem_limit_bytes),
        cost_estimate=cost,
    )(x_flat, wr_t, b1, we_t, b2)

    return out_flat.reshape(B, C, H, W)


def squeeze_excite_ref(x, w_reduce, b_reduce, w_expand, b_expand):
    """Pure-JAX reference mirroring the PyTorch forward."""
    pooled = jnp.mean(x.astype(jnp.float32), axis=(2, 3))             # (B, C)
    red = jnp.maximum(pooled @ w_reduce.T.astype(jnp.float32)
                      + b_reduce.astype(jnp.float32), 0.0)            # (B, R)
    gate = jax.nn.sigmoid(red @ w_expand.T.astype(jnp.float32)
                          + b_expand.astype(jnp.float32))             # (B, C)
    return (x.astype(jnp.float32) * gate[:, :, None, None]).astype(x.dtype)


def _make_params(key, in_chs, reduced_chs, dtype=jnp.float32):
    k1, k2, k3, k4 = jax.random.split(key, 4)
    fan_r = in_chs
    w_reduce = jax.random.uniform(k1, (reduced_chs, in_chs), dtype,
                                  -1.0 / math.sqrt(fan_r), 1.0 / math.sqrt(fan_r))
    b_reduce = jax.random.uniform(k2, (reduced_chs,), dtype,
                                  -1.0 / math.sqrt(fan_r), 1.0 / math.sqrt(fan_r))
    fan_e = reduced_chs
    w_expand = jax.random.uniform(k3, (in_chs, reduced_chs), dtype,
                                  -1.0 / math.sqrt(fan_e), 1.0 / math.sqrt(fan_e))
    b_expand = jax.random.uniform(k4, (in_chs,), dtype,
                                  -1.0 / math.sqrt(fan_e), 1.0 / math.sqrt(fan_e))
    return w_reduce, b_reduce, w_expand, b_expand


def _run_case(key, B, C, H, W, se_ratio=0.25, divisor=1):
    reduced_chs = make_divisible(C * se_ratio, divisor=divisor)
    kx, kp = jax.random.split(key)
    x = jax.random.normal(kx, (B, C, H, W), dtype=jnp.float32)
    params = _make_params(kp, C, reduced_chs)

    y = jax.block_until_ready(squeeze_excite(x, *params))
    y_ref = squeeze_excite_ref(x, *params)

    assert y.shape == x.shape and y.dtype == x.dtype
    err = float(jnp.max(jnp.abs(y.astype(jnp.float32) - y_ref.astype(jnp.float32))))
    assert err < 1e-4, f"case (B={B},C={C},H={H},W={W}) max abs err {err}"


if __name__ == "__main__":
    key = jax.random.PRNGKey(0)
    k1, k2, k3 = jax.random.split(key, 3)

    # Primary (module-consistent small shape): in_chs=4, se_ratio=0.25,
    # divisor=1 -> reduced_chs=1 (padded to 8 for the MXU dots).  HW=256 lanes.
    _run_case(k1, B=2, C=4, H=16, W=16)

    # Secondary: EfficientNet-like late-stage shape (C=128, HW=49).  Exercises
    # the no-transpose NCHW path with a lane-sparse (masked-store) writeback.
    _run_case(k2, B=2, C=128, H=7, W=7)

    # Tertiary: larger batch exercising the multi-step grid (bt divides B,
    # >=4 grid steps so both v7x cores would get >=2 steps each).
    _run_case(k3, B=8, C=32, H=8, W=8)

    print("KERNEL_OK")
</pallas_src>

<mosaic_0001>
module attributes {stable_mosaic.version = 11 : i64} {
  func.func @_se_kernel(%arg0: i32, %arg1: memref<2x4x256xf32, #tpu.memory_space<vmem>>, %arg2: memref<4x8xf32, #tpu.memory_space<vmem>>, %arg3: memref<1x8xf32, #tpu.memory_space<vmem>>, %arg4: memref<8x4xf32, #tpu.memory_space<vmem>>, %arg5: memref<1x4xf32, #tpu.memory_space<vmem>>, %arg6: memref<2x4x256xf32, #tpu.memory_space<vmem>>) attributes {dimension_semantics = [#tpu.dimension_semantics<parallel>], iteration_bounds = array<i64: 1>, scalar_prefetch = 0 : i64, scratch_operands = 0 : i64, tpu.core_type = #tpu.core_type<tc>, window_params = [{transform_indices = @transform_0, window_bounds = array<i64: 2, 4, 256>}, {pipeline_mode = #tpu.pipeline_mode<synchronous>, transform_indices = @transform_1, window_bounds = array<i64: 4, 8>}, {pipeline_mode = #tpu.pipeline_mode<synchronous>, transform_indices = @transform_2, window_bounds = array<i64: 1, 8>}, {pipeline_mode = #tpu.pipeline_mode<synchronous>, transform_indices = @transform_3, window_bounds = array<i64: 8, 4>}, {pipeline_mode = #tpu.pipeline_mode<synchronous>, transform_indices = @transform_4, window_bounds = array<i64: 1, 4>}, {transform_indices = @transform_5, window_bounds = array<i64: 2, 4, 256>}]} {
    %c0 = arith.constant 0 : index
    %c0_0 = arith.constant 0 : index
    %c0_1 = arith.constant 0 : index
    %0 = vector.load %arg1[%c0, %c0_0, %c0_1] : memref<2x4x256xf32, #tpu.memory_space<vmem>>, vector<2x4x256xf32>
    %cst = arith.constant dense<0.000000e+00> : vector<2x4xf32>
    %1 = vector.multi_reduction <add>, %0, %cst [2] : vector<2x4x256xf32> to vector<2x4xf32>
    %cst_2 = arith.constant 3.906250e-03 : f32
    %2 = vector.broadcast %cst_2 : f32 to vector<2x4xf32>
    %3 = arith.mulf %1, %2 : vector<2x4xf32>
    %c0_3 = arith.constant 0 : index
    %c0_4 = arith.constant 0 : index
    %4 = vector.load %arg2[%c0_3, %c0_4] : memref<4x8xf32, #tpu.memory_space<vmem>>, vector<4x8xf32>
    %cst_5 = arith.constant dense<0.000000e+00> : vector<2x8xf32>
    %5 = tpu.matmul %3, %4, %cst_5 {dimension_numbers = #tpu.dot_dimension_numbers<[1], [0], [0], [1], [0, 0, 1, 1], [], []>} : vector<2x4xf32>, vector<4x8xf32>, vector<2x8xf32> -> vector<2x8xf32>
    %c0_6 = arith.constant 0 : index
    %c0_7 = arith.constant 0 : index
    %6 = vector.load %arg3[%c0_6, %c0_7] : memref<1x8xf32, #tpu.memory_space<vmem>>, vector<1x8xf32>
    %7 = vector.broadcast %6 : vector<1x8xf32> to vector<2x8xf32>
    %8 = arith.addf %5, %7 : vector<2x8xf32>
    %cst_8 = arith.constant 0.000000e+00 : f32
    %9 = vector.broadcast %cst_8 : f32 to vector<2x8xf32>
    %10 = arith.maximumf %8, %9 : vector<2x8xf32>
    %c0_9 = arith.constant 0 : index
    %c0_10 = arith.constant 0 : index
    %11 = vector.load %arg4[%c0_9, %c0_10] : memref<8x4xf32, #tpu.memory_space<vmem>>, vector<8x4xf32>
    %cst_11 = arith.constant dense<0.000000e+00> : vector<2x4xf32>
    %12 = tpu.matmul %10, %11, %cst_11 {dimension_numbers = #tpu.dot_dimension_numbers<[1], [0], [0], [1], [0, 0, 1, 1], [], []>} : vector<2x8xf32>, vector<8x4xf32>, vector<2x4xf32> -> vector<2x4xf32>
    %c0_12 = arith.constant 0 : index
    %c0_13 = arith.constant 0 : index
    %13 = vector.load %arg5[%c0_12, %c0_13] : memref<1x4xf32, #tpu.memory_space<vmem>>, vector<1x4xf32>
    %14 = vector.broadcast %13 : vector<1x4xf32> to vector<2x4xf32>
    %15 = arith.addf %12, %14 : vector<2x4xf32>
    %16 = arith.negf %15 : vector<2x4xf32>
    %17 = math.exp %16 : vector<2x4xf32>
    %cst_14 = arith.constant 1.000000e+00 : f32
    %18 = vector.broadcast %cst_14 : f32 to vector<2x4xf32>
    %19 = arith.addf %18, %17 : vector<2x4xf32>
    %20 = arith.divf %18, %19 : vector<2x4xf32>
    %21 = vector.shape_cast %20 : vector<2x4xf32> to vector<2x4x1xf32>
    %22 = vector.broadcast %21 : vector<2x4x1xf32> to vector<2x4x256xf32>
    %23 = arith.mulf %0, %22 : vector<2x4x256xf32>
    %c0_15 = arith.constant 0 : index
    %c0_16 = arith.constant 0 : index
    %c0_17 = arith.constant 0 : index
    %24 = vector.load %arg6[%c0_15, %c0_16, %c0_17] : memref<2x4x256xf32, #tpu.memory_space<vmem>>, vector<2x4x256xf32>
    tpu.vector_store %arg6[%c0_15, %c0_16, %c0_17], %23 {strides = array<i32>} : memref<2x4x256xf32, #tpu.memory_space<vmem>>, vector<2x4x256xf32>,
    return
  }
  func.func @transform_0(%arg0: i32) -> (i32, i32, i32) {
    %c0_i32 = arith.constant 0 : i32
    %c0_i32_0 = arith.constant 0 : i32
    %c0_i32_1 = arith.constant 0 : i32
    return %arg0, %c0_i32, %c0_i32_0 : i32, i32, i32
  }
  func.func @transform_1(%arg0: i32) -> (i32, i32) {
    %c0_i32 = arith.constant 0 : i32
    %c0_i32_0 = arith.constant 0 : i32
    %c0_i32_1 = arith.constant 0 : i32
    return %c0_i32, %c0_i32_0 : i32, i32
  }
  func.func @transform_2(%arg0: i32) -> (i32, i32) {
    %c0_i32 = arith.constant 0 : i32
    %c0_i32_0 = arith.constant 0 : i32
    %c0_i32_1 = arith.constant 0 : i32
    return %c0_i32, %c0_i32_0 : i32, i32
  }
  func.func @transform_3(%arg0: i32) -> (i32, i32) {
    %c0_i32 = arith.constant 0 : i32
    %c0_i32_0 = arith.constant 0 : i32
    %c0_i32_1 = arith.constant 0 : i32
    return %c0_i32, %c0_i32_0 : i32, i32
  }
  func.func @transform_4(%arg0: i32) -> (i32, i32) {
    %c0_i32 = arith.constant 0 : i32
    %c0_i32_0 = arith.constant 0 : i32
    %c0_i32_1 = arith.constant 0 : i32
    return %c0_i32, %c0_i32_0 : i32, i32
  }
  func.func @transform_5(%arg0: i32) -> (i32, i32, i32) {
    %c0_i32 = arith.constant 0 : i32
    %c0_i32_0 = arith.constant 0 : i32
    %c0_i32_1 = arith.constant 0 : i32
    return %arg0, %c0_i32, %c0_i32_0 : i32, i32, i32
  }
}

</mosaic_0001>

<bundles_post_ra>
// kernel: tpu_custom_call.1
= control target key start
LH: loop header
LB: loop body
LE: loop exit
PB: predicated region body
PF: predicated region fallthrough
CT: control target
= control target key end

     0   :  { %10 = vsyncpa [#allocation3], 0  ;;  %s473_s0 = inlined_call_operand.hbm [shape: f32[2,4,256], index: 0, kind: input, shape index: {}]   ;;  %s474_s1 = inlined_call_operand.vmem [shape: f32[4,8], index: 1, kind: input, shape index: {}]   ;;  %s475_s2 = inlined_call_operand.vmem [shape: f32[1,8], index: 2, kind: input, shape index: {}]   ;;  %s476_s3 = inlined_call_operand.vmem [shape: f32[8,4], index: 3, kind: input, shape index: {}]   ;;  %s477_s4 = inlined_call_operand.vmem [shape: f32[1,4], index: 4, kind: input, shape index: {}]   ;;  %s478_s5 = inlined_call_operand.hbm [shape: f32[2,4,256], index: 5, kind: output, shape index: {}]  }
   0x1   :  { %11 = vsyncpa [#allocation4], 0  ;;  %s377_s18 = smov [#allocation2]   ;;  %s329_s22 = scalar_lea.hbm %s473_s0, 256 }
   0x2   :  { %s17_s19 = sshll.u32 %s377_s18, 4  ;;  %p330_p0 = scmp.ne.s32.totalorder %s473_s0, %s329_s22  ;;  %s18_s19 = int_to_ptr.vmem [resolvable:$true] %s17_s19 }
   0x3   :  { %p333_p1 = scmp.lt.u32.totalorder %s329_s22, %s473_s0 }
   0x5   :  { %p335_p2 = pnand %p333_p1, %p330_p0 }
   0x7   :  { %338 = shalt.err (!%p335_p2)
}
   0x8   :  { %s339_s27 = scalar_lea.vmem %s18_s19, 256  ;;  %p344_p4 = scmp.lt.s32.totalorder %s18_s19, %s18_s19 }
   0x9   :  { %p340_p3 = scmp.ne.s32.totalorder %s18_s19, %s339_s27  ;;  %p345_p5 = scmp.lt.s32.totalorder %s339_s27, %s339_s27 }
   0xb   :  { %p346_p6 = por %p345_p5, %p344_p4 }
   0xd   :  { %p347_p7 = pnand %p346_p6, %p340_p3 }
   0xf   :  { %350 = shalt.err (!%p347_p7)
}
  0x10   :  { %s378_s28 = smov 128   ;;  %s379_s29 = smov 8  }
  0x11   :  { %23 = dma.hbm_to_vmem [thread:$0]  %s473_s0, 256, %s18_s19, [#allocation3], %s378_s28, %s378_s28, %s379_s29  }
  0x12   :  { %373 = dma.done.wait [#allocation3], 256  }
  0x13   :  { %374 = vsyncadd [#allocation3], 4294967040  ;;  %vm43_vm0 = vcmask 1043456   ;;  %v429_v0 = vld [vmem:[#allocation2] sm:$0xff]  ;;  %v431_v1 = vld [vmem:[#allocation2 + $0x8] sm:$0xff]  ;;  %v380_v11 = vmov 0.0   ;;  %v66_v12 = vlaneseq }
  0x14   :  { %v39_v2 = vcombine.high %v429_v0, %v429_v0  ;;  %v44_v3 = vsel %vm43_vm0, %v429_v0, 0.0  ;;  %v40_v4 = vcombine.high %v431_v1, %v431_v1  ;;  %v49_v6 = vsel %vm43_vm0, %v431_v1, 0.0  ;;  %v56_v10 = vld [vmem:[%s474_s1] sm:$0xf]  ;;  %306 = vmatprep.subr.mxu0 %v380_v11  ;;  %311 = vmatprep.subr.mxu1 %v380_v11 }
  0x15   :  { %vm381_vm1 = vmmov 0   ;;  %307 = vmatpush3.msk.msra.mxu0 %vm43_vm0, %v56_v10  ;;  %v67_v13 = vand.u32 127, %v66_v12  ;;  %v69_v14 = vshrl.u32 %v66_v12, 7  ;;  %vm76_vm2 = vcmask 1041409   ;;  %v155_v23 = vld [vmem:[%s476_s3] sm:$0xff] }
  0x16   :  { %v45_v5 = vsel %vm43_vm0, %v39_v2, 0.0  ;;  %v50_v7 = vsel %vm43_vm0, %v40_v4, 0.0  ;;  %308 = vmatprep.mubr.msk.f32.mxu0 %vm381_vm1, %v380_v11  ;;  %313 = vmatprep.mubr.msk.f32.mxu1 %vm381_vm1, %v380_v11  ;;  %vm78_vm3 = vcmask 31744   ;;  %v296_v24 = vld [vmem:[%s475_s2] ss:$0 sm:$0xff]  ;;  %vm163_vm4 = vcmask 64512  }
  0x17   :  { %v46_v8 = vadd.f32 %v45_v5, %v44_v3  ;;  %v51_v9 = vadd.f32 %v50_v7, %v49_v6  ;;  %v70_v16 = vsub.s32 %v67_v13, %v69_v14  ;;  %312 = vmatpush3.msra.mxu1 %v155_v23  ;;  %v299_v29 = vld [vmem:[%s477_s4] ss:$0 sm:$0xff]  ;;  %v245_v36 = vsub.s32 0, %v69_v14  ;;  %s383_s2 = smov [#allocation5]  }
  0x18   :  { %v252_v39 = vsub.s32 1, %v69_v14  ;;  %v382_v41 = vmov 839922192   ;;  %s284_s3 = sshll.u32 %s383_s2, 4  ;;  %s285_s3 = int_to_ptr.vmem [resolvable:$true] %s284_s3 }
  0x19   :  { %47 = vadd.xlane.f32.xlu0 %v46_v8  ;;  %v260_v42 = vunpack.c.l.s4 %v382_v41  ;;  %s351_s4 = scalar_lea.vmem %s285_s3, 256  ;;  %p356_p9 = scmp.lt.s32.totalorder %s285_s3, %s285_s3 }
  0x1a   :  { %p352_p8 = scmp.ne.s32.totalorder %s285_s3, %s351_s4  ;;  %p357_p10 = scmp.lt.s32.totalorder %s351_s4, %s351_s4 }
  0x1b   :  { %v261_v43 = vunpack.c.0.s8 %v260_v42 }
  0x1c   :  { %p358_p11 = por %p357_p10, %p356_p9 }
  0x1d   :  { %52 = vadd.xlane.f32.xlu0 %v51_v9  ;;  %v264_v44 = vsub.s32 %v261_v43, %v69_v14 }
  0x1e   :  { %p359_p12 = pnand %p358_p11, %p352_p8 }
  0xa6   :  { %v48_v15 = vpop.xlane.xlu0 %47 }
  0xa7   :  { %v54_v17 = vmul.f32 0.00390625, %v48_v15 }
  0xa9   :  { %v71_v20 = vrot.slane %v54_v17, %v70_v16 }
  0xaa   :  { %v53_v18 = vpop.xlane.xlu0 %52 }
  0xab   :  { %v55_v19 = vmul.f32 0.00390625, %v53_v18 }
  0xad   :  { %v75_v21 = vrot.slane %v55_v19, %v70_v16 }
  0xaf   :  { %v77_v22 = vsel %vm76_vm2, %v75_v21, %v71_v20 }
  0xb0   :  { %309 = vmatmul.mubr.msk.f32.vlgmr.msra.gmra.mrb[0].mxu0 %vm78_vm3, %v77_v22 }
 0x183   :  { %v150_v25 = vpop.f32.mrb[0].mxu0 }
 0x184   :  { %v151_v26 = vadd.f32 %v296_v24, %v150_v25  ;;  %v310_v27 = vpop.f32.mrb[1].mxu0 }
 0x186   :  { %v154_v28 = vmax.f32 %v151_v26, 0.0 }
 0x188   :  { %314 = vmatmul.mubr.msk.f32.vlgmr.msra.gmra.mrb[0].mxu1 %vm163_vm4, %v154_v28 }
 0x25b   :  { %v233_v30 = vpop.f32.mrb[0].mxu1 }
 0x25c   :  { %v234_v31 = vadd.f32 %v299_v29, %v233_v30  ;;  %v315_v32 = vpop.f32.mrb[1].mxu1 }
 0x25e   :  { %v301_v33 = vmul.f32 -1.442695, %v234_v31 }
 0x260   :  { %325 = vpow2.f32 %v301_v33 }
 0x26a   :  { %v326_v34 = vpop.eup %325 }
 0x26b   :  { %v240_v35 = vadd.f32 1.0, %v326_v34 }
 0x26d   :  { %327 = vrcp.f32 %v240_v35 }
 0x277   :  { %v328_v37 = vpop.eup %327 }
 0x278   :  { %v246_v38 = vrot.slane %v328_v37, %v245_v36  ;;  %v253_v40 = vrot.slane %v328_v37, %v252_v39 }
 0x27a   :  { %248 = vbcast.lane.b32.xlu1 %v246_v38, 256 }
 0x27e   :  { %255 = vbcast.lane.b32.xlu1 %v253_v40, 256 }
 0x2ec   :  { %v249_v45 = vpop.permute.xlu1 %248 }
 0x2ed   :  { %v265_v46 = vrot.slane %v249_v45, %v264_v44 }
 0x2ef   :  { %v275_v47 = vmul.f32 %v265_v46, %v429_v0 }
 0x2f0   :  { %v256_v48 = vpop.permute.xlu1 %255 }
 0x2f1   :  { %277 = vst [vmem:[#allocation5] sm:$0xff] %v275_v47  ;;  %v272_v49 = vrot.slane %v256_v48, %v264_v44 }
 0x2f3   :  { %v276_v50 = vmul.f32 %v272_v49, %v431_v1 }
 0x2f5   :  { %278 = vst [vmem:[#allocation5 + $0x8] sm:$0xff] %v276_v50 }
 0x2f6   :  { %362 = shalt.err (!%p359_p12)
}
 0x2f7   :  { %s363_s15 = scalar_lea.hbm %s478_s5, 256 }
 0x2f8   :  { %p364_p13 = scmp.ne.s32.totalorder %s478_s5, %s363_s15  ;;  %p367_p0 = scmp.lt.u32.totalorder %s363_s15, %s478_s5 }
 0x2fa   :  { %p369_p1 = pnand %p367_p0, %p364_p13 }
 0x2fc   :  { %372 = shalt.err (!%p369_p1)
}
 0x2fd   :  { %290 = dma.vmem_to_hbm [thread:$0]  %s285_s3, 256, %s478_s5, [#allocation4], %s378_s28, %s378_s28, %s379_s29  }
 0x2fe   :  { %375 = dma.done.wait [#allocation4], 256  }
 0x2ff   :  { %376 = vsyncadd [#allocation4], 4294967040 }
 0x300   :  { %294 = vsyncpa [#allocation3], 1 }
 0x301   :  { %295 = vsyncpa [#allocation4], 1 }

</bundles_post_ra>
